<compile_context>
chip_gen: v6e
topology: v6e:2x2x1
jax: 0.10.0
libtpu: 0.0.40
codegen_flags: <defaults>
</compile_context>

<pallas_src>
import math
from functools import partial

import jax
import jax.numpy as jnp
from jax.experimental import pallas as pl
from jax.experimental.pallas import tpu as pltpu

_LANES = 128
_SUBLANES = 8
_MAX_TILE_ROWS = 2048          # (2048, 128) f32 block = 1 MiB per input
_MAX_PARALLEL_SLICES = 2       # v7x has 2 TensorCores; harmless on v5e/v6e


def _cdiv(a, b):
    return -(-a // b)


def _round_up(n, m):
    return _cdiv(n, m) * m


# ----------------------------------------------------------------------------
# Kernel helpers
# ----------------------------------------------------------------------------
def _nll_terms(mean, logvar, target, eps):
    # torch GaussianNLLLoss core (per element, without the 0.5 factor):
    #   log(max(var, eps)) + (mean - target)^2 / max(var, eps),  var = exp(lv)
    # Rewritten with a single exp:
    #   clv = max(lv, log(eps));  log(max(var,eps)) == clv;
    #   1 / max(var, eps) == exp(-clv)
    clv = jnp.maximum(logvar, math.log(eps))
    diff = mean - target
    return clv + diff * diff * jnp.exp(-clv)


def _row_mask(shape, tiles_per_slice, tile_rows, rows):
    # Valid-row mask based on the *unclamped* global tile id, so both the
    # partial last tile and the clamped overflow tile of the last slice
    # contribute exactly zero.
    tile_id = pl.program_id(0) * tiles_per_slice + pl.program_id(1)
    row0 = tile_id * tile_rows
    ridx = row0 + jax.lax.broadcasted_iota(jnp.int32, shape, 0)
    return ridx < rows


def _write_partials(out_ref, acc_ref):
    # Store the (1,128) per-lane accumulator into sublane 0 of the (8,128)
    # output block, zeros elsewhere (the wrapper just sums everything).
    sub = jax.lax.broadcasted_iota(jnp.int32, out_ref.shape, 0)
    out_ref[...] = jnp.where(sub == 0, acc_ref[...], 0.0)


# ----------------------------------------------------------------------------
# Kernels
# ----------------------------------------------------------------------------
def _nll_only_kernel(mean_ref, logvar_ref, target_ref,
                     nll_out, nll_acc,
                     *, rows, tile_rows, tiles_per_slice, needs_mask, eps):
    i = pl.program_id(1)

    @pl.when(i == 0)
    def _():
        nll_acc[...] = jnp.zeros_like(nll_acc)

    nll = _nll_terms(mean_ref[...].astype(jnp.float32),
                     logvar_ref[...].astype(jnp.float32),
                     target_ref[...].astype(jnp.float32), eps)
    if needs_mask:
        valid = _row_mask(nll.shape, tiles_per_slice, tile_rows, rows)
        nll = jnp.where(valid, nll, 0.0)
    nll_acc[...] += jnp.sum(nll, axis=0, keepdims=True)

    @pl.when(i == pl.num_programs(1) - 1)
    def _():
        _write_partials(nll_out, nll_acc)


def _full_loss_kernel(mean_ref, logvar_ref, target_ref, ph1_ref, ph2_ref,
                      nll_out, cons_out, consis_out,
                      nll_acc, cons_acc, consis_acc,
                      *, rows, tile_rows, tiles_per_slice, needs_mask, eps):
    i = pl.program_id(1)

    @pl.when(i == 0)
    def _():
        nll_acc[...] = jnp.zeros_like(nll_acc)
        cons_acc[...] = jnp.zeros_like(cons_acc)
        consis_acc[...] = jnp.zeros_like(consis_acc)

    mean = mean_ref[...].astype(jnp.float32)
    nll = _nll_terms(mean,
                     logvar_ref[...].astype(jnp.float32),
                     target_ref[...].astype(jnp.float32), eps)

    # Physical constraints (photon conservation + ratio consistency).
    ph1 = ph1_ref[...].astype(jnp.float32)
    ph2 = ph2_ref[...].astype(jnp.float32)
    total_ph = ph1 + ph2
    cons_err = total_ph * mean - ph1
    cons = cons_err * cons_err
    # Exact division: we are HBM-bound, so the approx reciprocal saved nothing
    # and cost ~1e-3 relative accuracy vs the PyTorch reference.
    consis_err = mean - ph1 / (total_ph + 1e-8)
    consis = consis_err * consis_err

    if needs_mask:
        valid = _row_mask(mean.shape, tiles_per_slice, tile_rows, rows)
        nll = jnp.where(valid, nll, 0.0)
        cons = jnp.where(valid, cons, 0.0)
        consis = jnp.where(valid, consis, 0.0)

    nll_acc[...] += jnp.sum(nll, axis=0, keepdims=True)
    cons_acc[...] += jnp.sum(cons, axis=0, keepdims=True)
    consis_acc[...] += jnp.sum(consis, axis=0, keepdims=True)

    @pl.when(i == pl.num_programs(1) - 1)
    def _():
        _write_partials(nll_out, nll_acc)
        _write_partials(cons_out, cons_acc)
        _write_partials(consis_out, consis_acc)


# ----------------------------------------------------------------------------
# Layout / wrapper
# ----------------------------------------------------------------------------
def _layout(rows, max_tile_rows, max_slices):
    """Pick (tile_rows, tiles_total, tiles_per_slice, num_slices, needs_mask).

    Tiles are balanced (<= max_tile_rows rows, multiple of 8, never larger
    than the array), the grid never rounds `rows` up to a tile multiple, and
    the tile count is split across up to `max_slices` parallel slices
    (TensorCores on v7x).
    """
    want_slices = max_slices if rows >= 16 * max_slices else 1
    tiles_total = max(_cdiv(rows, max_tile_rows), want_slices)
    if tiles_total == 1:
        tile_rows = rows                       # one block == whole array
    else:
        tile_rows = _round_up(_cdiv(rows, tiles_total), _SUBLANES)
        tiles_total = _cdiv(rows, tile_rows)
    num_slices = min(max_slices, tiles_total)
    tiles_per_slice = _cdiv(tiles_total, num_slices)
    needs_mask = (num_slices * tiles_per_slice * tile_rows != rows)
    return tile_rows, tiles_total, tiles_per_slice, num_slices, needs_mask


def _as_rows(x, n, rows):
    """Lane-dense (rows, 128) view of x, kept in its NATIVE dtype.

    ravel/reshape of a contiguous array is metadata-only; a copy (zero pad of
    < 128 elements) only happens when n is not a multiple of 128.  The padded
    zeros are value-neutral for every loss term, so no extra masking needed.
    """
    flat = jnp.ravel(x)
    pad = rows * _LANES - n
    if pad:
        flat = jnp.pad(flat, (0, pad))
    return flat.reshape(rows, _LANES)


class RatioGaussianNLLLoss:
    """Gaussian-NLL ratio loss with optional photon-conservation / consistency
    constraints (forward pass only).  Matches the PyTorch module semantics with
    reduction='mean'.  The returned loss_dict holds device scalars (0-d jnp
    arrays), not Python floats, so the whole call stays jittable.
    """

    def __init__(self, conservation_weight=0.1, consistency_weight=0.05,
                 eps=1e-6, reduction='mean', full=False,
                 max_tile_rows=_MAX_TILE_ROWS,
                 max_parallel_slices=_MAX_PARALLEL_SLICES):
        assert reduction == 'mean', "only reduction='mean' is implemented"
        self.conservation_weight = float(conservation_weight)
        self.consistency_weight = float(consistency_weight)
        self.eps = float(eps)
        self.full = bool(full)
        self.max_tile_rows = max(int(max_tile_rows), _SUBLANES)
        self.max_parallel_slices = max(int(max_parallel_slices), 1)

    def __call__(self, ratio_mean, ratio_log_var, target_ratio,
                 photons_ch1=None, photons_ch2=None):
        n = int(ratio_mean.size)
        rows = _cdiv(n, _LANES)
        (tile_rows, tiles_total, tiles_per_slice,
         num_slices, needs_mask) = _layout(rows, self.max_tile_rows,
                                           self.max_parallel_slices)
        grid = (num_slices, tiles_per_slice)

        def in_index_map(c, i):
            # Clamp so the overflow tile of the last slice (if any) re-reads a
            # valid block; its contribution is fully masked in-kernel.
            return (jnp.minimum(c * tiles_per_slice + i, tiles_total - 1), 0)

        in_spec = pl.BlockSpec((tile_rows, _LANES), in_index_map)
        out_spec = pl.BlockSpec((_SUBLANES, _LANES), lambda c, i: (c, 0))
        part_shape = jax.ShapeDtypeStruct((num_slices * _SUBLANES, _LANES),
                                          jnp.float32)
        # Blocks at the default 2048-row cap use <= 10 MiB double-buffered
        # VMEM, within every generation's default scoped limit (16 MiB v5e,
        # 32 MiB v6e/v7x); set vmem_limit_bytes only if you raise the cap.
        compiler_params = pltpu.CompilerParams(
            dimension_semantics=("parallel", "arbitrary"))

        mean2d = _as_rows(ratio_mean, n, rows)
        logvar2d = _as_rows(ratio_log_var, n, rows)
        target2d = _as_rows(target_ratio, n, rows)

        inv_n = 1.0 / float(n)
        full_const = 0.5 * math.log(2.0 * math.pi) if self.full else 0.0
        static = dict(rows=rows, tile_rows=tile_rows,
                      tiles_per_slice=tiles_per_slice,
                      needs_mask=needs_mask, eps=self.eps)

        if photons_ch1 is not None and photons_ch2 is not None:
            if int(photons_ch1.size) != n or int(photons_ch2.size) != n:
                raise ValueError("photon tensors must match the ratio size")
            ph1_2d = _as_rows(photons_ch1, n, rows)
            ph2_2d = _as_rows(photons_ch2, n, rows)
            nll_p, cons_p, consis_p = pl.pallas_call(
                partial(_full_loss_kernel, **static),
                grid=grid,
                in_specs=[in_spec] * 5,
                out_specs=(out_spec, out_spec, out_spec),
                out_shape=(part_shape, part_shape, part_shape),
                scratch_shapes=[pltpu.VMEM((1, _LANES), jnp.float32)
                                for _ in range(3)],
                compiler_params=compiler_params,
            )(mean2d, logvar2d, target2d, ph1_2d, ph2_2d)
            # Finalize (a handful of scalar flops) in the wrapper so each
            # TensorCore slice only emits raw partial sums.
            nll_mean = 0.5 * jnp.sum(nll_p) * inv_n + full_const
            cons_mean = jnp.sum(cons_p) * inv_n
            consis_mean = jnp.sum(consis_p) * inv_n
            total = (nll_mean
                     + self.conservation_weight * cons_mean
                     + self.consistency_weight * consis_mean)
            loss_dict = {'nll_loss': nll_mean,
                         'conservation_loss': cons_mean,
                         'consistency_loss': consis_mean}
            return total, loss_dict

        nll_p = pl.pallas_call(
            partial(_nll_only_kernel, **static),
            grid=grid,
            in_specs=[in_spec] * 3,
            out_specs=out_spec,
            out_shape=part_shape,
            scratch_shapes=[pltpu.VMEM((1, _LANES), jnp.float32)],
            compiler_params=compiler_params,
        )(mean2d, logvar2d, target2d)
        nll_mean = 0.5 * jnp.sum(nll_p) * inv_n + full_const
        return nll_mean, {'nll_loss': nll_mean}


# ----------------------------------------------------------------------------
# Pure-JAX reference (verification only)
# ----------------------------------------------------------------------------
def _reference(mean, logvar, target, ph1, ph2, cw, sw, eps, full):
    mean = jnp.ravel(mean).astype(jnp.float32)
    logvar = jnp.ravel(logvar).astype(jnp.float32)
    target = jnp.ravel(target).astype(jnp.float32)
    var = jnp.maximum(jnp.exp(logvar), eps)
    nll = 0.5 * (jnp.log(var) + (mean - target) ** 2 / var)
    if full:
        nll = nll + 0.5 * math.log(2.0 * math.pi)
    nll = jnp.mean(nll)
    ph1 = jnp.ravel(ph1).astype(jnp.float32)
    ph2 = jnp.ravel(ph2).astype(jnp.float32)
    tot = ph1 + ph2
    cons = jnp.mean((tot * mean - ph1) ** 2)
    consis = jnp.mean((mean - ph1 / (tot + 1e-8)) ** 2)
    return nll + cw * cons + sw * consis, nll, cons, consis


# ----------------------------------------------------------------------------
if __name__ == "__main__":
    key = jax.random.PRNGKey(0)
    RTOL, ATOL = 1e-4, 1e-4

    # ----- test 1: small batch, single block, full path + nll-only + bf16 ---
    B = 8
    k1, k2, k3, k4, k5 = jax.random.split(key, 5)
    ratio_mean = jax.random.uniform(k1, (B, 1), jnp.float32, 0.1, 0.9)
    ratio_log_var = jax.random.uniform(k2, (B, 1), jnp.float32, -3.0, 0.0)
    target_ratio = jax.random.uniform(k3, (B, 1), jnp.float32, 0.1, 0.9)
    photons_ch1 = jax.random.uniform(k4, (B,), jnp.float32, 50.0, 150.0)
    photons_ch2 = jax.random.uniform(k5, (B,), jnp.float32, 50.0, 150.0)

    loss_fn = RatioGaussianNLLLoss(0.1, 0.05, 1e-6, 'mean', False)
    total, d = loss_fn(ratio_mean, ratio_log_var, target_ratio,
                       photons_ch1, photons_ch2)
    total = jax.block_until_ready(total)

    ref_total, ref_nll, ref_cons, ref_consis = _reference(
        ratio_mean, ratio_log_var, target_ratio, photons_ch1, photons_ch2,
        0.1, 0.05, 1e-6, False)
    assert jnp.allclose(total, ref_total, rtol=RTOL, atol=ATOL)
    assert jnp.allclose(d['nll_loss'], ref_nll, rtol=RTOL, atol=ATOL)
    assert jnp.allclose(d['conservation_loss'], ref_cons, rtol=RTOL, atol=ATOL)
    assert jnp.allclose(d['consistency_loss'], ref_consis, rtol=RTOL, atol=ATOL)

    # NLL-only path
    nll_total, d2 = loss_fn(ratio_mean, ratio_log_var, target_ratio)
    jax.block_until_ready(nll_total)
    assert jnp.allclose(nll_total, ref_nll, rtol=RTOL, atol=ATOL)
    assert jnp.allclose(d2['nll_loss'], ref_nll, rtol=RTOL, atol=ATOL)

    # bf16 inputs travel through the DMA in native dtype; cast happens in-kernel.
    bf = jnp.bfloat16
    total_bf, _ = loss_fn(ratio_mean.astype(bf), ratio_log_var.astype(bf),
                          target_ratio.astype(bf), photons_ch1.astype(bf),
                          photons_ch2.astype(bf))
    jax.block_until_ready(total_bf)
    rbf = _reference(ratio_mean.astype(bf), ratio_log_var.astype(bf),
                     target_ratio.astype(bf), photons_ch1.astype(bf),
                     photons_ch2.astype(bf), 0.1, 0.05, 1e-6, False)
    assert jnp.allclose(total_bf, rbf[0], rtol=RTOL, atol=ATOL)

    # ----- test 2: multi-tile grid + 2 parallel slices + partial last block +
    #       clamped overflow tile, full=True (rows=18, tile_rows=8, tiles=3) --
    B2 = 2200
    j1, j2, j3, j4, j5 = jax.random.split(jax.random.PRNGKey(1), 5)
    rm2 = jax.random.uniform(j1, (B2, 1), jnp.float32, 0.1, 0.9)
    rlv2 = jax.random.uniform(j2, (B2, 1), jnp.float32, -3.0, 0.0)
    tr2 = jax.random.uniform(j3, (B2, 1), jnp.float32, 0.1, 0.9)
    p1_2 = jax.random.uniform(j4, (B2,), jnp.float32, 50.0, 150.0)
    p2_2 = jax.random.uniform(j5, (B2,), jnp.float32, 50.0, 150.0)

    loss_fn2 = RatioGaussianNLLLoss(0.1, 0.05, 1e-6, 'mean', True,
                                    max_tile_rows=8)   # forces multi-tile grid
    total2, d2b = loss_fn2(rm2, rlv2, tr2, p1_2, p2_2)
    total2 = jax.block_until_ready(total2)

    r_total2, r_nll2, r_cons2, r_consis2 = _reference(
        rm2, rlv2, tr2, p1_2, p2_2, 0.1, 0.05, 1e-6, True)
    assert jnp.allclose(total2, r_total2, rtol=RTOL, atol=ATOL)
    assert jnp.allclose(d2b['nll_loss'], r_nll2, rtol=RTOL, atol=ATOL)
    assert jnp.allclose(d2b['conservation_loss'], r_cons2, rtol=RTOL, atol=ATOL)
    assert jnp.allclose(d2b['consistency_loss'], r_consis2, rtol=RTOL, atol=ATOL)

    print("KERNEL_OK")
</pallas_src>

<mosaic_0001>
module attributes {stable_mosaic.version = 11 : i64} {
  func.func @_full_loss_kernel(%arg0: i32, %arg1: i32, %arg2: memref<1x128xf32, #tpu.memory_space<vmem>>, %arg3: memref<1x128xf32, #tpu.memory_space<vmem>>, %arg4: memref<1x128xf32, #tpu.memory_space<vmem>>, %arg5: memref<1x128xf32, #tpu.memory_space<vmem>>, %arg6: memref<1x128xf32, #tpu.memory_space<vmem>>, %arg7: memref<8x128xf32, #tpu.memory_space<vmem>>, %arg8: memref<8x128xf32, #tpu.memory_space<vmem>>, %arg9: memref<8x128xf32, #tpu.memory_space<vmem>>, %arg10: memref<1x128xf32, #tpu.memory_space<vmem>>, %arg11: memref<1x128xf32, #tpu.memory_space<vmem>>, %arg12: memref<1x128xf32, #tpu.memory_space<vmem>>) attributes {dimension_semantics = [#tpu.dimension_semantics<parallel>, #tpu.dimension_semantics<arbitrary>], iteration_bounds = array<i64: 1, 1>, scalar_prefetch = 0 : i64, scratch_operands = 3 : i64, tpu.core_type = #tpu.core_type<tc>, window_params = [{transform_indices = @transform_0, window_bounds = array<i64: 1, 128>}, {transform_indices = @transform_1, window_bounds = array<i64: 1, 128>}, {transform_indices = @transform_2, window_bounds = array<i64: 1, 128>}, {transform_indices = @transform_3, window_bounds = array<i64: 1, 128>}, {transform_indices = @transform_4, window_bounds = array<i64: 1, 128>}, {transform_indices = @transform_5, window_bounds = array<i64: 8, 128>}, {transform_indices = @transform_6, window_bounds = array<i64: 8, 128>}, {transform_indices = @transform_7, window_bounds = array<i64: 8, 128>}]} {
    %c0_i32 = arith.constant 0 : i32
    %0 = arith.cmpi eq, %arg1, %c0_i32 : i32
    %1 = arith.extui %0 : i1 to i32
    %c0_i32_0 = arith.constant 0 : i32
    %2 = arith.cmpi ne, %1, %c0_i32_0 : i32
    scf.if %2 {
      %cst_29 = arith.constant 0.000000e+00 : f32
      %44 = vector.broadcast %cst_29 : f32 to vector<1x128xf32>
      %c0_30 = arith.constant 0 : index
      %c0_31 = arith.constant 0 : index
      %45 = vector.load %arg10[%c0_30, %c0_31] : memref<1x128xf32, #tpu.memory_space<vmem>>, vector<1x128xf32>
      tpu.vector_store %arg10[%c0_30, %c0_31], %44 {strides = array<i32>} : memref<1x128xf32, #tpu.memory_space<vmem>>, vector<1x128xf32>,
      %cst_32 = arith.constant 0.000000e+00 : f32
      %46 = vector.broadcast %cst_32 : f32 to vector<1x128xf32>
      %c0_33 = arith.constant 0 : index
      %c0_34 = arith.constant 0 : index
      %47 = vector.load %arg11[%c0_33, %c0_34] : memref<1x128xf32, #tpu.memory_space<vmem>>, vector<1x128xf32>
      tpu.vector_store %arg11[%c0_33, %c0_34], %46 {strides = array<i32>} : memref<1x128xf32, #tpu.memory_space<vmem>>, vector<1x128xf32>,
      %cst_35 = arith.constant 0.000000e+00 : f32
      %48 = vector.broadcast %cst_35 : f32 to vector<1x128xf32>
      %c0_36 = arith.constant 0 : index
      %c0_37 = arith.constant 0 : index
      %49 = vector.load %arg12[%c0_36, %c0_37] : memref<1x128xf32, #tpu.memory_space<vmem>>, vector<1x128xf32>
      tpu.vector_store %arg12[%c0_36, %c0_37], %48 {strides = array<i32>} : memref<1x128xf32, #tpu.memory_space<vmem>>, vector<1x128xf32>,
    } else {
    }
    %c0 = arith.constant 0 : index
    %c0_1 = arith.constant 0 : index
    %3 = vector.load %arg2[%c0, %c0_1] : memref<1x128xf32, #tpu.memory_space<vmem>>, vector<1x128xf32>
    %c0_2 = arith.constant 0 : index
    %c0_3 = arith.constant 0 : index
    %4 = vector.load %arg3[%c0_2, %c0_3] : memref<1x128xf32, #tpu.memory_space<vmem>>, vector<1x128xf32>
    %c0_4 = arith.constant 0 : index
    %c0_5 = arith.constant 0 : index
    %5 = vector.load %arg4[%c0_4, %c0_5] : memref<1x128xf32, #tpu.memory_space<vmem>>, vector<1x128xf32>
    %cst = arith.constant -13.8155107 : f32
    %6 = vector.broadcast %cst : f32 to vector<1x128xf32>
    %7 = arith.maximumf %4, %6 : vector<1x128xf32>
    %8 = arith.subf %3, %5 : vector<1x128xf32>
    %9 = arith.mulf %8, %8 : vector<1x128xf32>
    %cst_6 = arith.constant 0.000000e+00 : f32
    %10 = vector.broadcast %cst_6 : f32 to vector<1x128xf32>
    %11 = arith.subf %10, %7 : vector<1x128xf32>
    %12 = math.exp %11 : vector<1x128xf32>
    %13 = arith.mulf %9, %12 : vector<1x128xf32>
    %14 = arith.addf %7, %13 : vector<1x128xf32>
    %c0_7 = arith.constant 0 : index
    %c0_8 = arith.constant 0 : index
    %15 = vector.load %arg5[%c0_7, %c0_8] : memref<1x128xf32, #tpu.memory_space<vmem>>, vector<1x128xf32>
    %c0_9 = arith.constant 0 : index
    %c0_10 = arith.constant 0 : index
    %16 = vector.load %arg6[%c0_9, %c0_10] : memref<1x128xf32, #tpu.memory_space<vmem>>, vector<1x128xf32>
    %17 = arith.addf %15, %16 : vector<1x128xf32>
    %18 = arith.mulf %17, %3 : vector<1x128xf32>
    %19 = arith.subf %18, %15 : vector<1x128xf32>
    %20 = arith.mulf %19, %19 : vector<1x128xf32>
    %cst_11 = arith.constant 9.99999993E-9 : f32
    %21 = vector.broadcast %cst_11 : f32 to vector<1x128xf32>
    %22 = arith.addf %17, %21 : vector<1x128xf32>
    %23 = arith.divf %15, %22 : vector<1x128xf32>
    %24 = arith.subf %3, %23 : vector<1x128xf32>
    %25 = arith.mulf %24, %24 : vector<1x128xf32>
    %c0_12 = arith.constant 0 : index
    %c0_13 = arith.constant 0 : index
    %26 = vector.load %arg10[%c0_12, %c0_13] : memref<1x128xf32, #tpu.memory_space<vmem>>, vector<1x128xf32>
    %cst_14 = arith.constant dense<0.000000e+00> : vector<128xf32>
    %27 = vector.multi_reduction <add>, %14, %cst_14 [0] : vector<1x128xf32> to vector<128xf32>
    %28 = vector.shape_cast %27 : vector<128xf32> to vector<1x128xf32>
    %29 = arith.addf %26, %28 : vector<1x128xf32>
    %c0_15 = arith.constant 0 : index
    %c0_16 = arith.constant 0 : index
    %30 = vector.load %arg10[%c0_15, %c0_16] : memref<1x128xf32, #tpu.memory_space<vmem>>, vector<1x128xf32>
    tpu.vector_store %arg10[%c0_15, %c0_16], %29 {strides = array<i32>} : memref<1x128xf32, #tpu.memory_space<vmem>>, vector<1x128xf32>,
    %c0_17 = arith.constant 0 : index
    %c0_18 = arith.constant 0 : index
    %31 = vector.load %arg11[%c0_17, %c0_18] : memref<1x128xf32, #tpu.memory_space<vmem>>, vector<1x128xf32>
    %cst_19 = arith.constant dense<0.000000e+00> : vector<128xf32>
    %32 = vector.multi_reduction <add>, %20, %cst_19 [0] : vector<1x128xf32> to vector<128xf32>
    %33 = vector.shape_cast %32 : vector<128xf32> to vector<1x128xf32>
    %34 = arith.addf %31, %33 : vector<1x128xf32>
    %c0_20 = arith.constant 0 : index
    %c0_21 = arith.constant 0 : index
    %35 = vector.load %arg11[%c0_20, %c0_21] : memref<1x128xf32, #tpu.memory_space<vmem>>, vector<1x128xf32>
    tpu.vector_store %arg11[%c0_20, %c0_21], %34 {strides = array<i32>} : memref<1x128xf32, #tpu.memory_space<vmem>>, vector<1x128xf32>,
    %c0_22 = arith.constant 0 : index
    %c0_23 = arith.constant 0 : index
    %36 = vector.load %arg12[%c0_22, %c0_23] : memref<1x128xf32, #tpu.memory_space<vmem>>, vector<1x128xf32>
    %cst_24 = arith.constant dense<0.000000e+00> : vector<128xf32>
    %37 = vector.multi_reduction <add>, %25, %cst_24 [0] : vector<1x128xf32> to vector<128xf32>
    %38 = vector.shape_cast %37 : vector<128xf32> to vector<1x128xf32>
    %39 = arith.addf %36, %38 : vector<1x128xf32>
    %c0_25 = arith.constant 0 : index
    %c0_26 = arith.constant 0 : index
    %40 = vector.load %arg12[%c0_25, %c0_26] : memref<1x128xf32, #tpu.memory_space<vmem>>, vector<1x128xf32>
    tpu.vector_store %arg12[%c0_25, %c0_26], %39 {strides = array<i32>} : memref<1x128xf32, #tpu.memory_space<vmem>>, vector<1x128xf32>,
    %c0_i32_27 = arith.constant 0 : i32
    %41 = arith.cmpi eq, %arg1, %c0_i32_27 : i32
    %42 = arith.extui %41 : i1 to i32
    %c0_i32_28 = arith.constant 0 : i32
    %43 = arith.cmpi ne, %42, %c0_i32_28 : i32
    scf.if %43 {
      %44 = tpu.iota {dimensions = array<i32: 0>} : vector<8x128xi32>
      %c0_i32_29 = arith.constant 0 : i32
      %45 = vector.broadcast %c0_i32_29 : i32 to vector<8x128xi32>
      %46 = arith.cmpi eq, %44, %45 : vector<8x128xi32>
      %c0_30 = arith.constant 0 : index
      %c0_31 = arith.constant 0 : index
      %47 = vector.load %arg10[%c0_30, %c0_31] : memref<1x128xf32, #tpu.memory_space<vmem>>, vector<1x128xf32>
      %cst_32 = arith.constant 0.000000e+00 : f32
      %48 = vector.shape_cast %47 : vector<1x128xf32> to vector<1x128xf32>
      %49 = vector.broadcast %48 : vector<1x128xf32> to vector<8x128xf32>
      %50 = vector.broadcast %cst_32 : f32 to vector<8x128xf32>
      %51 = arith.select %46, %49, %50 : vector<8x128xi1>, vector<8x128xf32>
      %c0_33 = arith.constant 0 : index
      %c0_34 = arith.constant 0 : index
      %52 = vector.load %arg7[%c0_33, %c0_34] : memref<8x128xf32, #tpu.memory_space<vmem>>, vector<8x128xf32>
      tpu.vector_store %arg7[%c0_33, %c0_34], %51 {strides = array<i32>} : memref<8x128xf32, #tpu.memory_space<vmem>>, vector<8x128xf32>,
      %53 = tpu.iota {dimensions = array<i32: 0>} : vector<8x128xi32>
      %c0_i32_35 = arith.constant 0 : i32
      %54 = vector.broadcast %c0_i32_35 : i32 to vector<8x128xi32>
      %55 = arith.cmpi eq, %53, %54 : vector<8x128xi32>
      %c0_36 = arith.constant 0 : index
      %c0_37 = arith.constant 0 : index
      %56 = vector.load %arg11[%c0_36, %c0_37] : memref<1x128xf32, #tpu.memory_space<vmem>>, vector<1x128xf32>
      %cst_38 = arith.constant 0.000000e+00 : f32
      %57 = vector.shape_cast %56 : vector<1x128xf32> to vector<1x128xf32>
      %58 = vector.broadcast %57 : vector<1x128xf32> to vector<8x128xf32>
      %59 = vector.broadcast %cst_38 : f32 to vector<8x128xf32>
      %60 = arith.select %55, %58, %59 : vector<8x128xi1>, vector<8x128xf32>
      %c0_39 = arith.constant 0 : index
      %c0_40 = arith.constant 0 : index
      %61 = vector.load %arg8[%c0_39, %c0_40] : memref<8x128xf32, #tpu.memory_space<vmem>>, vector<8x128xf32>
      tpu.vector_store %arg8[%c0_39, %c0_40], %60 {strides = array<i32>} : memref<8x128xf32, #tpu.memory_space<vmem>>, vector<8x128xf32>,
      %62 = tpu.iota {dimensions = array<i32: 0>} : vector<8x128xi32>
      %c0_i32_41 = arith.constant 0 : i32
      %63 = vector.broadcast %c0_i32_41 : i32 to vector<8x128xi32>
      %64 = arith.cmpi eq, %62, %63 : vector<8x128xi32>
      %c0_42 = arith.constant 0 : index
      %c0_43 = arith.constant 0 : index
      %65 = vector.load %arg12[%c0_42, %c0_43] : memref<1x128xf32, #tpu.memory_space<vmem>>, vector<1x128xf32>
      %cst_44 = arith.constant 0.000000e+00 : f32
      %66 = vector.shape_cast %65 : vector<1x128xf32> to vector<1x128xf32>
      %67 = vector.broadcast %66 : vector<1x128xf32> to vector<8x128xf32>
      %68 = vector.broadcast %cst_44 : f32 to vector<8x128xf32>
      %69 = arith.select %64, %67, %68 : vector<8x128xi1>, vector<8x128xf32>
      %c0_45 = arith.constant 0 : index
      %c0_46 = arith.constant 0 : index
      %70 = vector.load %arg9[%c0_45, %c0_46] : memref<8x128xf32, #tpu.memory_space<vmem>>, vector<8x128xf32>
      tpu.vector_store %arg9[%c0_45, %c0_46], %69 {strides = array<i32>} : memref<8x128xf32, #tpu.memory_space<vmem>>, vector<8x128xf32>,
    } else {
    }
    return
  }
  func.func @transform_0(%arg0: i32, %arg1: i32) -> (i32, i32) {
    %c1_i32 = arith.constant 1 : i32
    %0 = arith.muli %arg0, %c1_i32 : i32
    %1 = arith.addi %0, %arg1 : i32
    %c0_i32 = arith.constant 0 : i32
    %2 = arith.minsi %1, %c0_i32 : i32
    %c0_i32_0 = arith.constant 0 : i32
    %c0_i32_1 = arith.constant 0 : i32
    return %2, %c0_i32_0 : i32, i32
  }
  func.func @transform_1(%arg0: i32, %arg1: i32) -> (i32, i32) {
    %c1_i32 = arith.constant 1 : i32
    %0 = arith.muli %arg0, %c1_i32 : i32
    %1 = arith.addi %0, %arg1 : i32
    %c0_i32 = arith.constant 0 : i32
    %2 = arith.minsi %1, %c0_i32 : i32
    %c0_i32_0 = arith.constant 0 : i32
    %c0_i32_1 = arith.constant 0 : i32
    return %2, %c0_i32_0 : i32, i32
  }
  func.func @transform_2(%arg0: i32, %arg1: i32) -> (i32, i32) {
    %c1_i32 = arith.constant 1 : i32
    %0 = arith.muli %arg0, %c1_i32 : i32
    %1 = arith.addi %0, %arg1 : i32
    %c0_i32 = arith.constant 0 : i32
    %2 = arith.minsi %1, %c0_i32 : i32
    %c0_i32_0 = arith.constant 0 : i32
    %c0_i32_1 = arith.constant 0 : i32
    return %2, %c0_i32_0 : i32, i32
  }
  func.func @transform_3(%arg0: i32, %arg1: i32) -> (i32, i32) {
    %c1_i32 = arith.constant 1 : i32
    %0 = arith.muli %arg0, %c1_i32 : i32
    %1 = arith.addi %0, %arg1 : i32
    %c0_i32 = arith.constant 0 : i32
    %2 = arith.minsi %1, %c0_i32 : i32
    %c0_i32_0 = arith.constant 0 : i32
    %c0_i32_1 = arith.constant 0 : i32
    return %2, %c0_i32_0 : i32, i32
  }
  func.func @transform_4(%arg0: i32, %arg1: i32) -> (i32, i32) {
    %c1_i32 = arith.constant 1 : i32
    %0 = arith.muli %arg0, %c1_i32 : i32
    %1 = arith.addi %0, %arg1 : i32
    %c0_i32 = arith.constant 0 : i32
    %2 = arith.minsi %1, %c0_i32 : i32
    %c0_i32_0 = arith.constant 0 : i32
    %c0_i32_1 = arith.constant 0 : i32
    return %2, %c0_i32_0 : i32, i32
  }
  func.func @transform_5(%arg0: i32, %arg1: i32) -> (i32, i32) {
    %c0_i32 = arith.constant 0 : i32
    %c0_i32_0 = arith.constant 0 : i32
    return %arg0, %c0_i32 : i32, i32
  }
  func.func @transform_6(%arg0: i32, %arg1: i32) -> (i32, i32) {
    %c0_i32 = arith.constant 0 : i32
    %c0_i32_0 = arith.constant 0 : i32
    return %arg0, %c0_i32 : i32, i32
  }
  func.func @transform_7(%arg0: i32, %arg1: i32) -> (i32, i32) {
    %c0_i32 = arith.constant 0 : i32
    %c0_i32_0 = arith.constant 0 : i32
    return %arg0, %c0_i32 : i32, i32
  }
}

</mosaic_0001>

<bundles_post_ra>
// kernel: tpu_custom_call.1
= control target key start
LH: loop header
LB: loop body
LE: loop exit
PB: predicated region body
PF: predicated region fallthrough
CT: control target
= control target key end

     0   :  { %13 = vsyncpa [#allocation6], 0  ;;  %s441_s0 = inlined_call_operand.hbm [shape: f32[1,128], index: 0, kind: input, shape index: {}]   ;;  %s442_s1 = inlined_call_operand.vmem [shape: f32[1,128], index: 1, kind: input, shape index: {}]   ;;  %s443_s2 = inlined_call_operand.vmem [shape: f32[1,128], index: 2, kind: input, shape index: {}]   ;;  %s444_s3 = inlined_call_operand.vmem [shape: f32[1,128], index: 3, kind: input, shape index: {}]   ;;  %s445_s4 = inlined_call_operand.vmem [shape: f32[1,128], index: 4, kind: input, shape index: {}]   ;;  %s446_s5 = inlined_call_operand.hbm [shape: f32[8,128], index: 5, kind: output, shape index: {0}]   ;;  %s447_s6 = inlined_call_operand.hbm [shape: f32[8,128], index: 6, kind: output, shape index: {1}]   ;;  %s448_s7 = inlined_call_operand.hbm [shape: f32[8,128], index: 7, kind: output, shape index: {2}]  }
   0x1   :  { %14 = vsyncpa [#allocation7], 0 }
   0x2   :  { %15 = vsyncpa [#allocation10], 0  ;;  %s369_s24 = smov [#allocation5]  }
   0x3   :  { %s27_s25 = sshll.u32 %s369_s24, 4  ;;  %s28_s25 = int_to_ptr.vmem [resolvable:$true] %s27_s25 }
   0x4   :  { %s291_s26 = scalar_lea.vmem %s28_s25, 16  ;;  %s295_s27 = scalar_lea.vmem %s28_s25, 32 }
   0x5   :  { %p292_p0 = scmp.ne.s32.totalorder %s28_s25, %s291_s26  ;;  %p296_p1 = scmp.lt.s32.totalorder %s28_s25, %s28_s25 }
   0x6   :  { %p297_p2 = scmp.lt.s32.totalorder %s295_s27, %s291_s26 }
   0x8   :  { %p298_p3 = por %p297_p2, %p296_p1 }
   0xa   :  { %p299_p4 = pnand %p298_p3, %p292_p0 }
   0xc   :  { %302 = shalt.err (!%p299_p4)
}
   0xd   :  { %30 = dma.hbm_to_vmem [thread:$0]  %s441_s0, 16, %s28_s25, [#allocation6]  }
   0xe   :  { %363 = dma.done.wait [#allocation6], 16  }
   0xf   :  { %364 = vsyncadd [#allocation6], 4294967280  ;;  %v370_v0 = vmov 0.0   ;;  %v148_v1 = vld [vmem:[#allocation5] sm:$0x1]  ;;  %v185_v14 = vlaneseq }
  0x10   :  { %146 = vst [vmem:[#allocation3] sm:$0x1] %v370_v0  ;;  %145 = vst [vmem:[#allocation2] sm:$0x1] %v370_v0  ;;  %v159_v2 = vld [vmem:[%s444_s3] sm:$0x1] }
  0x11   :  { %147 = vst [vmem:[#allocation4] sm:$0x1] %v370_v0  ;;  %v160_v3 = vld [vmem:[%s445_s4] sm:$0x1]  ;;  %v186_v17 = vshrl.u32 %v185_v14, 7 }
  0x12   :  { %v161_v4 = vadd.f32 %v160_v3, %v159_v2  ;;  %v149_v5 = vld [vmem:[%s442_s1] sm:$0x1]  ;;  %s371_s1 = smov [#allocation9]  }
  0x13   :  { %v151_v6 = vmax.f32 %v149_v5, -13.815511  ;;  %v150_v16 = vld [vmem:[%s443_s2] sm:$0x1]  ;;  %s231_s4 = sshll.u32 %s371_s1, 4  ;;  %vm187_vm0 = vcmp.eq.s32.totalorder %v186_v17, 0  ;;  %s232_s4 = int_to_ptr.vmem [resolvable:$true] %s231_s4 }
  0x14   :  { %v162_v7 = vmul.f32 %v161_v4, %v148_v1  ;;  %v165_v8 = vadd.f32 1e-08, %v161_v4  ;;  %v152_v18 = vsub.f32 %v148_v1, %v150_v16  ;;  %s303_s13 = scalar_lea.vmem %s232_s4, 128  ;;  %p308_p6 = scmp.lt.s32.totalorder %s232_s4, %s232_s4 }
  0x15   :  { %v154_v9 = vsub.f32 0.0, %v151_v6  ;;  %p304_p5 = scmp.ne.s32.totalorder %s232_s4, %s303_s13  ;;  %p309_p7 = scmp.lt.s32.totalorder %s303_s13, %s303_s13 }
  0x16   :  { %v163_v10 = vsub.f32 %v162_v7, %v159_v2  ;;  %279 = vrcp.f32 %v165_v8  ;;  %v153_v20 = vmul.f32 %v152_v18, %v152_v18 }
  0x17   :  { %v174_v11 = vld [vmem:[#allocation3] sm:$0x1]  ;;  %v155_v12 = vmul.f32 1.442695, %v154_v9  ;;  %p310_p8 = por %p309_p7, %p308_p6 }
  0x18   :  { %v164_v13 = vmul.f32 %v163_v10, %v163_v10 }
  0x19   :  { %281 = vpow2.f32 %v155_v12  ;;  %p311_p9 = pnand %p310_p8, %p304_p5 }
  0x1a   :  { %v176_v15 = vadd.f32 %v174_v11, %v164_v13 }
  0x1c   :  { %177 = vst [vmem:[#allocation3] sm:$0x1] %v176_v15 }
  0x23   :  { %v280_v19 = vpop.eup %279  ;;  %v272_v21 = vld [vmem:[#allocation3] ss:$0 sm:$0xff] }
  0x24   :  { %v167_v22 = vmul.f32 %v280_v19, %v159_v2  ;;  %v204_v23 = vsel %vm187_vm0, %v272_v21, 0.0 }
  0x25   :  { %205 = vst [vmem:[#allocation9] sm:$0xff] %v204_v23 }
  0x26   :  { %v282_v24 = vpop.eup %281  ;;  %v168_v25 = vsub.f32 %v148_v1, %v167_v22 }
  0x27   :  { %314 = shalt.err (!%p311_p9)
}
  0x28   :  { %234 = dma.vmem_to_hbm [thread:$0]  %s232_s4, 128, %s447_s6, [#allocation10]   ;;  %v157_v26 = vmul.f32 %v282_v24, %v153_v20  ;;  %v178_v27 = vld [vmem:[#allocation4] sm:$0x1]  ;;  %v170_v28 = vld [vmem:[#allocation2] sm:$0x1]  ;;  %v169_v29 = vmul.f32 %v168_v25, %v168_v25 }
  0x29   :  { %s372_s15 = smov [#allocation11]   ;;  %s373_s17 = smov [#allocation8]  }
  0x2a   :  { %v158_v30 = vadd.f32 %v157_v26, %v151_v6  ;;  %v180_v31 = vadd.f32 %v178_v27, %v169_v29  ;;  %s241_s16 = sshll.u32 %s372_s15, 4  ;;  %s221_s18 = sshll.u32 %s373_s17, 4  ;;  %s242_s16 = int_to_ptr.vmem [resolvable:$true] %s241_s16  ;;  %s222_s18 = int_to_ptr.vmem [resolvable:$true] %s221_s18 }
  0x2b   :  { %s323_s6 = scalar_lea.vmem %s242_s16, 128  ;;  %p328_p11 = scmp.lt.s32.totalorder %s242_s16, %s242_s16 }
  0x2c   :  { %v172_v32 = vadd.f32 %v170_v28, %v158_v30  ;;  %181 = vst [vmem:[#allocation4] sm:$0x1] %v180_v31  ;;  %p324_p10 = scmp.ne.s32.totalorder %s242_s16, %s323_s6  ;;  %p329_p12 = scmp.lt.s32.totalorder %s323_s6, %s323_s6 }
  0x2e   :  { %173 = vst [vmem:[#allocation2] sm:$0x1] %v172_v32  ;;  %p330_p13 = por %p329_p12, %p328_p11 }
  0x30   :  { %p331_p0 = pnand %p330_p13, %p324_p10 }
  0x33   :  { %v273_v33 = vld [vmem:[#allocation4] ss:$0 sm:$0xff] }
  0x34   :  { %v213_v35 = vsel %vm187_vm0, %v273_v33, 0.0 }
  0x35   :  { %v271_v34 = vld [vmem:[#allocation2] ss:$0 sm:$0xff]  ;;  %214 = vst [vmem:[#allocation11] sm:$0xff] %v213_v35 }
  0x36   :  { %v195_v36 = vsel %vm187_vm0, %v271_v34, 0.0 }
  0x37   :  { %196 = vst [vmem:[#allocation8] sm:$0xff] %v195_v36 }
  0x38   :  { %334 = shalt.err (!%p331_p0)
}
  0x39   :  { %244 = dma.vmem_to_hbm [thread:$0]  %s242_s16, 128, %s448_s7, [#allocation10]  }
  0x3a   :  { %s343_s21 = scalar_lea.vmem %s222_s18, 128  ;;  %p348_p2 = scmp.lt.s32.totalorder %s222_s18, %s222_s18 }
  0x3b   :  { %p344_p1 = scmp.ne.s32.totalorder %s222_s18, %s343_s21  ;;  %p349_p3 = scmp.lt.s32.totalorder %s343_s21, %s343_s21 }
  0x3d   :  { %p350_p4 = por %p349_p3, %p348_p2 }
  0x3f   :  { %p351_p5 = pnand %p350_p4, %p344_p1 }
  0x41   :  { %354 = shalt.err (!%p351_p5)
}
  0x42   :  { %224 = dma.vmem_to_hbm [thread:$0]  %s222_s18, 128, %s446_s5, [#allocation7]  }
  0x43   :  { %365 = dma.done.wait [#allocation7], 128  }
  0x44   :  { %366 = vsyncadd [#allocation7], 4294967168 }
  0x45   :  { %367 = dma.done.wait [#allocation10], 256  }
  0x46   :  { %368 = vsyncadd [#allocation10], 4294967040 }
  0x47   :  { %254 = vsyncpa [#allocation6], 1 }
  0x48   :  { %255 = vsyncpa [#allocation7], 1 }
  0x49   :  { %256 = vsyncpa [#allocation10], 1 }

</bundles_post_ra>
